<compile_context>
chip_gen: v5e
topology: v5e:2x2
jax: 0.10.0
libtpu: 0.0.40
codegen_flags: <defaults>
</compile_context>

<pallas_src>
import jax
import jax.numpy as jnp
from jax.experimental import pallas as pl
from jax.experimental.pallas import tpu as pltpu


def _cls_head_kernel(x_ref, w_ref, b_ref, o_ref):
    # Fused hot path: widen -> ReLU (VPU) -> matmul (MXU, f32 acc) -> bias add.
    x = x_ref[...].astype(jnp.float32)        # .float() in the torch forward
    x = jnp.maximum(x, 0.0)                   # nn.ReLU()
    y = jnp.dot(x, w_ref[...], preferred_element_type=jnp.float32)  # nn.Linear matmul
    o_ref[...] = y + b_ref[...]               # bias broadcast over batch rows


def _choose_tile_m(batch, in_dims, n_pad, x_itemsize,
                   vmem_budget_bytes=16 * 1024 * 1024):
    """Pick a batch-tile size that fits a conservative VMEM budget.

    Budget accounts for Pallas double-buffering of the x tile and the output
    tile, plus the resident (double-buffered) weight/bias blocks. The 16 MiB
    budget leaves ample headroom even on v7x (64 MiB physical / 32 MiB default
    scoped VMEM).
    """
    resident = 2 * (in_dims * n_pad * 4) + 2 * (n_pad * 4)          # weight + bias
    per_row = 2 * (in_dims * x_itemsize) + 2 * (n_pad * 4)          # x tile + out tile
    tm = (vmem_budget_bytes - resident) // max(per_row, 1)
    tm = max(8, min(int(tm), 2048))
    tm = (tm // 8) * 8                                              # sublane multiple
    if batch <= tm:
        return batch                                                # single full block
    return tm


def classification_head(x, weight, bias, *, tile_m=None):
    """ReLU + Linear head.

    Args:
      x:      (batch, in_dims)        any float dtype (widened to f32 in-kernel)
      weight: (in_dims, num_classes)  (== torch_linear.weight.T)
      bias:   (num_classes,)
      tile_m: optional batch-tile override (multiple of 8).
    Returns:
      (batch, num_classes) float32
    """
    batch, in_dims = x.shape
    in_dims_w, num_classes = weight.shape
    assert in_dims == in_dims_w, "weight must be (in_dims, num_classes)"

    # Pad the class dim to a full lane width (multiple of 128) for unmasked,
    # lane-dense output stores. Padded columns are exact zeros and are sliced
    # off after the call.
    n_pad = max(128, ((num_classes + 127) // 128) * 128)
    w_p = jnp.zeros((in_dims, n_pad), jnp.float32)
    w_p = w_p.at[:, :num_classes].set(weight.astype(jnp.float32))
    b_p = jnp.zeros((1, n_pad), jnp.float32)
    b_p = b_p.at[:, :num_classes].set(bias.astype(jnp.float32))

    if tile_m is None:
        tm = _choose_tile_m(batch, in_dims, n_pad, x.dtype.itemsize)
    else:
        tm = min(tile_m, batch) if batch < tile_m else tile_m
    grid = pl.cdiv(batch, tm)

    out_padded = pl.pallas_call(
        _cls_head_kernel,
        out_shape=jax.ShapeDtypeStruct((batch, n_pad), jnp.float32),
        grid_spec=pl.GridSpec(
            grid=(grid,),
            in_specs=[
                # x tile marches along the batch axis (double-buffered by Pallas).
                pl.BlockSpec((tm, in_dims), lambda i: (i, 0)),
                # Weight & bias: constant block index -> stay resident in VMEM.
                pl.BlockSpec((in_dims, n_pad), lambda i: (0, 0)),
                pl.BlockSpec((1, n_pad), lambda i: (0, 0)),
            ],
            out_specs=pl.BlockSpec((tm, n_pad), lambda i: (i, 0)),
        ),
        compiler_params=pltpu.CompilerParams(
            # Batch tiles are independent -> shard across TensorCores on v7x.
            dimension_semantics=("parallel",)),
    )(x, w_p, b_p)

    return out_padded[:, :num_classes]


def reference(x, weight, bias):
    return jnp.maximum(x.astype(jnp.float32), 0.0) @ weight.astype(jnp.float32) \
        + bias.astype(jnp.float32)[None, :]


if __name__ == "__main__":
    # mparams['source'] != 'hub'; in_dims=32, num_classes=10.
    in_dims, num_classes = 32, 10

    key = jax.random.PRNGKey(0)
    kx, kw, kb, kx2 = jax.random.split(key, 4)

    # Deterministic init mimicking nn.Linear: U(-1/sqrt(in), 1/sqrt(in)).
    bound = 1.0 / (in_dims ** 0.5)
    # PyTorch stores weight as (out, in); we keep the transposed (in, out) layout.
    weight = jax.random.uniform(kw, (in_dims, num_classes), jnp.float32,
                                minval=-bound, maxval=bound)
    bias = jax.random.uniform(kb, (num_classes,), jnp.float32,
                              minval=-bound, maxval=bound)

    # Case 1: tiny batch -> single full-array block path.
    batch1 = 2
    x1 = jax.random.normal(kx, (batch1, in_dims), dtype=jnp.float32)
    out1 = jax.block_until_ready(classification_head(x1, weight, bias))
    ref1 = reference(x1, weight, bias)
    assert out1.shape == (batch1, num_classes)
    assert jnp.allclose(out1, ref1, atol=1e-5, rtol=1e-5), "mismatch vs reference (case 1)"

    # Case 2: larger batch with an explicit small tile -> exercises the batch grid
    # (3 grid steps) with the weight/bias blocks held resident across steps.
    batch2 = 24
    x2 = jax.random.normal(kx2, (batch2, in_dims), dtype=jnp.float32)
    out2 = jax.block_until_ready(classification_head(x2, weight, bias, tile_m=8))
    ref2 = reference(x2, weight, bias)
    assert out2.shape == (batch2, num_classes)
    assert jnp.allclose(out2, ref2, atol=1e-5, rtol=1e-5), "mismatch vs reference (case 2)"

    print("KERNEL_OK")
</pallas_src>

<mosaic_0001>
module attributes {stable_mosaic.version = 11 : i64} {
  func.func @_cls_head_kernel(%arg0: i32, %arg1: memref<2x32xf32, #tpu.memory_space<vmem>>, %arg2: memref<32x128xf32, #tpu.memory_space<vmem>>, %arg3: memref<1x128xf32, #tpu.memory_space<vmem>>, %arg4: memref<2x128xf32, #tpu.memory_space<vmem>>) attributes {dimension_semantics = [#tpu.dimension_semantics<parallel>], iteration_bounds = array<i64: 1>, scalar_prefetch = 0 : i64, scratch_operands = 0 : i64, tpu.core_type = #tpu.core_type<tc>, window_params = [{transform_indices = @transform_0, window_bounds = array<i64: 2, 32>}, {pipeline_mode = #tpu.pipeline_mode<synchronous>, transform_indices = @transform_1, window_bounds = array<i64: 32, 128>}, {pipeline_mode = #tpu.pipeline_mode<synchronous>, transform_indices = @transform_2, window_bounds = array<i64: 1, 128>}, {transform_indices = @transform_3, window_bounds = array<i64: 2, 128>}]} {
    %c0 = arith.constant 0 : index
    %c0_0 = arith.constant 0 : index
    %0 = vector.load %arg1[%c0, %c0_0] : memref<2x32xf32, #tpu.memory_space<vmem>>, vector<2x32xf32>
    %cst = arith.constant 0.000000e+00 : f32
    %1 = vector.broadcast %cst : f32 to vector<2x32xf32>
    %2 = arith.maximumf %0, %1 : vector<2x32xf32>
    %c0_1 = arith.constant 0 : index
    %c0_2 = arith.constant 0 : index
    %3 = vector.load %arg2[%c0_1, %c0_2] : memref<32x128xf32, #tpu.memory_space<vmem>>, vector<32x128xf32>
    %cst_3 = arith.constant dense<0.000000e+00> : vector<2x128xf32>
    %4 = tpu.matmul %2, %3, %cst_3 {dimension_numbers = #tpu.dot_dimension_numbers<[1], [0], [0], [1], [0, 0, 1, 1], [], []>} : vector<2x32xf32>, vector<32x128xf32>, vector<2x128xf32> -> vector<2x128xf32>
    %c0_4 = arith.constant 0 : index
    %c0_5 = arith.constant 0 : index
    %5 = vector.load %arg3[%c0_4, %c0_5] : memref<1x128xf32, #tpu.memory_space<vmem>>, vector<1x128xf32>
    %6 = vector.broadcast %5 : vector<1x128xf32> to vector<2x128xf32>
    %7 = arith.addf %4, %6 : vector<2x128xf32>
    %c0_6 = arith.constant 0 : index
    %c0_7 = arith.constant 0 : index
    %8 = vector.load %arg4[%c0_6, %c0_7] : memref<2x128xf32, #tpu.memory_space<vmem>>, vector<2x128xf32>
    tpu.vector_store %arg4[%c0_6, %c0_7], %7 {strides = array<i32>} : memref<2x128xf32, #tpu.memory_space<vmem>>, vector<2x128xf32>,
    return
  }
  func.func @transform_0(%arg0: i32) -> (i32, i32) {
    %c0_i32 = arith.constant 0 : i32
    %c0_i32_0 = arith.constant 0 : i32
    return %arg0, %c0_i32 : i32, i32
  }
  func.func @transform_1(%arg0: i32) -> (i32, i32) {
    %c0_i32 = arith.constant 0 : i32
    %c0_i32_0 = arith.constant 0 : i32
    %c0_i32_1 = arith.constant 0 : i32
    return %c0_i32, %c0_i32_0 : i32, i32
  }
  func.func @transform_2(%arg0: i32) -> (i32, i32) {
    %c0_i32 = arith.constant 0 : i32
    %c0_i32_0 = arith.constant 0 : i32
    %c0_i32_1 = arith.constant 0 : i32
    return %c0_i32, %c0_i32_0 : i32, i32
  }
  func.func @transform_3(%arg0: i32) -> (i32, i32) {
    %c0_i32 = arith.constant 0 : i32
    %c0_i32_0 = arith.constant 0 : i32
    return %arg0, %c0_i32 : i32, i32
  }
}

</mosaic_0001>

<bundles_post_ra>
// kernel: tpu_custom_call.1
= control target key start
LH: loop header
LB: loop body
LE: loop exit
PB: predicated region body
PF: predicated region fallthrough
CT: control target
= control target key end

     0   :  { %8 = vsyncpa [#allocation3], 0  ;;  %s220_s0 = inlined_call_operand.hbm [shape: f32[2,32], index: 0, kind: input, shape index: {}]   ;;  %s221_s1 = inlined_call_operand.hbm [shape: f32[32,128], index: 1, kind: input, shape index: {}]   ;;  %s222_s2 = inlined_call_operand.vmem [shape: f32[1,128], index: 2, kind: input, shape index: {}]   ;;  %s223_s3 = inlined_call_operand.hbm [shape: f32[2,128], index: 3, kind: output, shape index: {}]  }
   0x1   :  { %9 = vsyncpa [#allocation6], 0 }
   0x2   :  { %10 = vsyncpa [#allocation4], 0  ;;  %s16_s14 = sshll.u32 %s220_s0, 4  ;;  %s183_s15 = smov [#allocation2]   ;;  %s17_s14 = int_to_ptr.hbm [resolvable:$true] %s16_s14 }
   0x3   :  { %s18_s16 = sshll.u32 %s183_s15, 4  ;;  %s26_s19 = sshll.u32 %s221_s1, 4  ;;  %s19_s16 = int_to_ptr.vmem [resolvable:$true] %s18_s16  ;;  %s27_s19 = int_to_ptr.hbm [resolvable:$true] %s26_s19 }
   0x4   :  { %21 = dma.hbm_to_vmem [thread:$0]  %s17_s14, 32, %s19_s16, [#allocation3]  }
   0x5   :  { %s184_s20 = smov [#allocation5]   ;;  %s185_s22 = smov 128  }
   0x6   :  { %s28_s21 = sshll.u32 %s184_s20, 4  ;;  %s186_s23 = smov 8   ;;  %s29_s21 = int_to_ptr.vmem [resolvable:$true] %s28_s21 }
   0x7   :  { %34 = dma.hbm_to_vmem [thread:$0]  %s27_s19, 512, %s29_s21, [#allocation6], %s185_s22, %s185_s22, %s186_s23  }
   0x8   :  { %177 = dma.done.wait [#allocation3], 32  }
   0x9   :  { %178 = vsyncadd [#allocation3], 4294967264 }
   0xa   :  { %179 = dma.done.wait [#allocation6], 512  }
   0xb   :  { %180 = vsyncadd [#allocation6], 4294966784  ;;  %v50_v0 = vld [vmem:[#allocation5 + $0x18] sm:$0xff]  ;;  %v49_v1 = vld [vmem:[#allocation5 + $0x10] sm:$0xff]  ;;  %vm55_vm0 = vcmask 261120   ;;  %s187_s24 = smov [#allocation7]  }
   0xc   :  { %71 = vmatpush.msra.mxu0 %v50_v0  ;;  %v45_v2 = vld [vmem:[#allocation2] sm:$0x3]  ;;  %v48_v3 = vld [vmem:[#allocation5 + $0x8] sm:$0xff]  ;;  %v47_v4 = vld [vmem:[#allocation5] sm:$0xff]  ;;  %s85_s25 = sshll.u32 %s187_s24, 4  ;;  %s87_s28 = sshll.u32 %s223_s3, 4  ;;  %s86_s25 = int_to_ptr.vmem [resolvable:$true] %s85_s25  ;;  %s88_s28 = int_to_ptr.hbm [resolvable:$true] %s87_s28 }
   0xd   :  { %v46_v5 = vmax.f32 %v45_v2, 0.0  ;;  %v104_v6 = vld [vmem:[%s222_s2] ss:$0 sm:$0xff] }
   0xe   :  { %72 = vmatpush.msra.mxu0 %v49_v1 }
  0x10   :  { %73 = vmatpush.msra.mxu0 %v48_v3 }
  0x12   :  { %74 = vmatpush.msra.mxu0 %v47_v4 }
  0x13   :  { %98 = vmatmul.msk.f32.vlgmr.msra.gmra.mxu0 %vm55_vm0, %v46_v5 }
  0x90   :  { %v76_v7 = vpop.f32.mrf.mxu0 }
  0x91   :  { %v77_v8 = vadd.f32 %v104_v6, %v76_v7 }
  0x93   :  { %79 = vst [vmem:[#allocation7] sm:$0x3] %v77_v8 }
  0x94   :  { %90 = dma.vmem_to_hbm [thread:$0]  %s86_s25, 32, %s88_s28, [#allocation4]  }
  0x95   :  { %181 = dma.done.wait [#allocation4], 32  }
  0x96   :  { %182 = vsyncadd [#allocation4], 4294967264 }
  0x97   :  { %95 = vsyncpa [#allocation3], 1 }
  0x98   :  { %96 = vsyncpa [#allocation6], 1 }
  0x99   :  { %97 = vsyncpa [#allocation4], 1 }

</bundles_post_ra>
